<compile_context>
chip_gen: v7x
topology: tpu7x:2x2x1
jax: 0.10.0
libtpu: 0.0.40
codegen_flags: <defaults>
</compile_context>

<pallas_src>
import functools

import jax
import jax.numpy as jnp
import numpy as np
from jax.experimental import pallas as pl
from jax.experimental.pallas import tpu as pltpu


def _aft_kernel(x_ref, wq_ref, wk_ref, wv_ref, wp_ref, o_ref):
    BB, A, F = x_ref.shape
    H = wq_ref.shape[1]

    x = x_ref[...]                                   # (BB, A, F)  f32
    xf = x.reshape(BB * A, F)                        # (rows, F)   layout-preserving (A % 8 == 0)

    # Weights arrive pre-scaled and pre-transposed ([in, out]); cast x to the
    # weight dtype (f32 or bf16), accumulate in f32 on the MXU.
    xm = xf.astype(wq_ref.dtype)
    q = jnp.dot(xm, wq_ref[...], preferred_element_type=jnp.float32)   # (rows, H)
    k = jnp.dot(xm, wk_ref[...], preferred_element_type=jnp.float32)   # (rows, H)
    v = jnp.dot(xm, wv_ref[...], preferred_element_type=jnp.float32)   # (rows, H)

    kb = k.reshape(BB, A, H)
    vb = v.reshape(BB, A, H)

    # softmax over the sequence axis (PyTorch dim=1), per batch element.
    k_max = jnp.max(kb, axis=1, keepdims=True)       # (BB, 1, H)
    e = jnp.exp(kb - k_max)                          # (BB, A, H)
    denom = jnp.sum(e, axis=1, keepdims=True)        # (BB, 1, H)
    probs = e * pl.reciprocal(denom, approx=True)    # (BB, A, H)

    # dropout(p=0.15) is identity in eval mode.

    # global context: sum over the sequence axis.
    weights = jnp.sum(probs * vb, axis=1, keepdims=True)               # (BB, 1, H)

    # gate with sigmoid(q), project back to dim, add residual.
    yt = jax.nn.sigmoid(q).reshape(BB, A, H) * weights                 # (BB, A, H)
    ytf = yt.reshape(BB * A, H).astype(wp_ref.dtype)
    out = xf + jnp.dot(ytf, wp_ref[...], preferred_element_type=jnp.float32)  # (rows, F)

    o_ref[...] = out.reshape(BB, A, F).astype(o_ref.dtype)


def _choose_block_b(B, A, target_rows=256):
    """Largest divisor of B such that block_b * A stays near `target_rows`."""
    cap = max(1, -(-target_rows // A))   # ceil(target_rows / A)
    best = 1
    for bb in range(1, B + 1):
        if B % bb == 0 and bb <= cap:
            best = bb
    return best


def aft_forward(x, w_qkv, w_proj, *, hidden_dim, block_b=None, matmul_dtype=None):
    """x: [B, A, F] f32;  w_qkv: [3H, F] (PyTorch layout);  w_proj: [F, H]."""
    B, A, F = x.shape
    H = hidden_dim
    qkv_gain = 1.0 / np.sqrt(F)    # lr_mult=1.0 / sqrt(in_features=dim)
    proj_gain = 1.0 / np.sqrt(H)   # lr_mult=1.0 / sqrt(in_features=hidden_dim)

    # Fold gains + transpose + split ONCE outside the kernel.
    w_dtype = x.dtype if matmul_dtype is None else matmul_dtype
    w_qkv_t = (w_qkv * qkv_gain).T.astype(w_dtype)   # [F, 3H]
    wq_t = w_qkv_t[:, 0 * H:1 * H]                   # [F, H]
    wk_t = w_qkv_t[:, 1 * H:2 * H]                   # [F, H]
    wv_t = w_qkv_t[:, 2 * H:3 * H]                   # [F, H]
    wp_t = (w_proj * proj_gain).T.astype(w_dtype)    # [H, F]

    if block_b is None:
        block_b = _choose_block_b(B, A)
    assert B % block_b == 0, "block_b must divide B"

    return pl.pallas_call(
        _aft_kernel,
        out_shape=jax.ShapeDtypeStruct((B, A, F), x.dtype),
        grid_spec=pltpu.PrefetchScalarGridSpec(
            num_scalar_prefetch=0,
            grid=(B // block_b,),
            in_specs=[
                pl.BlockSpec((block_b, A, F), lambda b: (b, 0, 0)),
                pl.BlockSpec((F, H), lambda b: (0, 0)),
                pl.BlockSpec((F, H), lambda b: (0, 0)),
                pl.BlockSpec((F, H), lambda b: (0, 0)),
                pl.BlockSpec((H, F), lambda b: (0, 0)),
            ],
            out_specs=pl.BlockSpec((block_b, A, F), lambda b: (b, 0, 0)),
        ),
        input_output_aliases={0: 0},   # residual output reuses x's buffer
        compiler_params=pltpu.CompilerParams(
            dimension_semantics=("parallel",),
        ),
    )(x, wq_t, wk_t, wv_t, wp_t)


def aft_reference(x, w_qkv, w_proj, *, hidden_dim):
    """Pure-JAX reference mirroring the PyTorch forward (eval mode, mask=None)."""
    B, A, F = x.shape
    H = hidden_dim
    qkv = x @ (w_qkv * (1.0 / np.sqrt(F))).T                     # [B, A, 3H]
    q, k, v = qkv[..., :H], qkv[..., H:2 * H], qkv[..., 2 * H:]
    probs = jax.nn.softmax(k, axis=1)
    weights = jnp.sum(probs * v, axis=1, keepdims=True)          # [B, 1, H]
    yt = jax.nn.sigmoid(q) * weights                             # [B, A, H]
    return x + yt @ (w_proj * (1.0 / np.sqrt(H))).T


if __name__ == "__main__":
    B, A, dim, hidden_dim = 2, 8, 32, 32

    key = jax.random.PRNGKey(0)
    kx, kw1, kw2 = jax.random.split(key, 3)

    x = jax.random.normal(kx, (B, A, dim), dtype=jnp.float32)
    # nn.init.uniform_(weight, -1/lr_mult, 1/lr_mult) with lr_mult=1.0
    w_qkv = jax.random.uniform(kw1, (3 * hidden_dim, dim), dtype=jnp.float32,
                               minval=-1.0, maxval=1.0)
    w_proj = jax.random.uniform(kw2, (dim, hidden_dim), dtype=jnp.float32,
                                minval=-1.0, maxval=1.0)

    # Reference first: x is donated to the kernel output via input_output_aliases.
    ref = aft_reference(x, w_qkv, w_proj, hidden_dim=hidden_dim)
    ref = np.asarray(jax.block_until_ready(ref))

    out = aft_forward(x, w_qkv, w_proj, hidden_dim=hidden_dim)
    out = jax.block_until_ready(out)

    # Tolerance accounts for the approximate (EUP) reciprocal in the softmax denom.
    np.testing.assert_allclose(np.asarray(out), ref, rtol=5e-3, atol=5e-3)

    print("KERNEL_OK")
</pallas_src>

<mosaic_0001>
module attributes {stable_mosaic.version = 11 : i64} {
  func.func @_aft_kernel(%arg0: i32, %arg1: memref<2x8x32xf32, #tpu.memory_space<vmem>>, %arg2: memref<32x32xf32, #tpu.memory_space<vmem>>, %arg3: memref<32x32xf32, #tpu.memory_space<vmem>>, %arg4: memref<32x32xf32, #tpu.memory_space<vmem>>, %arg5: memref<32x32xf32, #tpu.memory_space<vmem>>, %arg6: memref<2x8x32xf32, #tpu.memory_space<vmem>>) attributes {dimension_semantics = [#tpu.dimension_semantics<parallel>], iteration_bounds = array<i64: 1>, scalar_prefetch = 0 : i64, scratch_operands = 0 : i64, tpu.core_type = #tpu.core_type<tc>, window_params = [{transform_indices = @transform_0, window_bounds = array<i64: 2, 8, 32>}, {pipeline_mode = #tpu.pipeline_mode<synchronous>, transform_indices = @transform_1, window_bounds = array<i64: 32, 32>}, {pipeline_mode = #tpu.pipeline_mode<synchronous>, transform_indices = @transform_2, window_bounds = array<i64: 32, 32>}, {pipeline_mode = #tpu.pipeline_mode<synchronous>, transform_indices = @transform_3, window_bounds = array<i64: 32, 32>}, {pipeline_mode = #tpu.pipeline_mode<synchronous>, transform_indices = @transform_4, window_bounds = array<i64: 32, 32>}, {transform_indices = @transform_5, window_bounds = array<i64: 2, 8, 32>}]} {
    %c0 = arith.constant 0 : index
    %c0_0 = arith.constant 0 : index
    %c0_1 = arith.constant 0 : index
    %0 = vector.load %arg1[%c0, %c0_0, %c0_1] : memref<2x8x32xf32, #tpu.memory_space<vmem>>, vector<2x8x32xf32>
    %1 = vector.shape_cast %0 : vector<2x8x32xf32> to vector<16x32xf32>
    %c0_2 = arith.constant 0 : index
    %c0_3 = arith.constant 0 : index
    %2 = vector.load %arg2[%c0_2, %c0_3] : memref<32x32xf32, #tpu.memory_space<vmem>>, vector<32x32xf32>
    %cst = arith.constant dense<0.000000e+00> : vector<16x32xf32>
    %3 = tpu.matmul %1, %2, %cst {dimension_numbers = #tpu.dot_dimension_numbers<[1], [0], [0], [1], [0, 0, 1, 1], [], []>} : vector<16x32xf32>, vector<32x32xf32>, vector<16x32xf32> -> vector<16x32xf32>
    %c0_4 = arith.constant 0 : index
    %c0_5 = arith.constant 0 : index
    %4 = vector.load %arg3[%c0_4, %c0_5] : memref<32x32xf32, #tpu.memory_space<vmem>>, vector<32x32xf32>
    %cst_6 = arith.constant dense<0.000000e+00> : vector<16x32xf32>
    %5 = tpu.matmul %1, %4, %cst_6 {dimension_numbers = #tpu.dot_dimension_numbers<[1], [0], [0], [1], [0, 0, 1, 1], [], []>} : vector<16x32xf32>, vector<32x32xf32>, vector<16x32xf32> -> vector<16x32xf32>
    %c0_7 = arith.constant 0 : index
    %c0_8 = arith.constant 0 : index
    %6 = vector.load %arg4[%c0_7, %c0_8] : memref<32x32xf32, #tpu.memory_space<vmem>>, vector<32x32xf32>
    %cst_9 = arith.constant dense<0.000000e+00> : vector<16x32xf32>
    %7 = tpu.matmul %1, %6, %cst_9 {dimension_numbers = #tpu.dot_dimension_numbers<[1], [0], [0], [1], [0, 0, 1, 1], [], []>} : vector<16x32xf32>, vector<32x32xf32>, vector<16x32xf32> -> vector<16x32xf32>
    %8 = vector.shape_cast %5 : vector<16x32xf32> to vector<2x8x32xf32>
    %9 = vector.shape_cast %7 : vector<16x32xf32> to vector<2x8x32xf32>
    %cst_10 = arith.constant dense<0xFF800000> : vector<2x32xf32>
    %10 = vector.multi_reduction <maximumf>, %8, %cst_10 [1] : vector<2x8x32xf32> to vector<2x32xf32>
    %11 = vector.shape_cast %10 : vector<2x32xf32> to vector<2x1x32xf32>
    %12 = vector.broadcast %11 : vector<2x1x32xf32> to vector<2x8x32xf32>
    %13 = arith.subf %8, %12 : vector<2x8x32xf32>
    %14 = math.exp %13 : vector<2x8x32xf32>
    %cst_11 = arith.constant dense<0.000000e+00> : vector<2x32xf32>
    %15 = vector.multi_reduction <add>, %14, %cst_11 [1] : vector<2x8x32xf32> to vector<2x32xf32>
    %16 = vector.shape_cast %15 : vector<2x32xf32> to vector<2x1x32xf32>
    %17 = tpu.reciprocal %16 {approx = true} : vector<2x1x32xf32> -> vector<2x1x32xf32>
    %18 = vector.broadcast %17 : vector<2x1x32xf32> to vector<2x8x32xf32>
    %19 = arith.mulf %14, %18 : vector<2x8x32xf32>
    %20 = arith.mulf %19, %9 : vector<2x8x32xf32>
    %cst_12 = arith.constant dense<0.000000e+00> : vector<2x32xf32>
    %21 = vector.multi_reduction <add>, %20, %cst_12 [1] : vector<2x8x32xf32> to vector<2x32xf32>
    %22 = vector.shape_cast %21 : vector<2x32xf32> to vector<2x1x32xf32>
    %23 = arith.negf %3 : vector<16x32xf32>
    %24 = math.exp %23 : vector<16x32xf32>
    %cst_13 = arith.constant 1.000000e+00 : f32
    %25 = vector.broadcast %cst_13 : f32 to vector<16x32xf32>
    %26 = arith.addf %25, %24 : vector<16x32xf32>
    %27 = arith.divf %25, %26 : vector<16x32xf32>
    %28 = vector.shape_cast %27 : vector<16x32xf32> to vector<2x8x32xf32>
    %29 = vector.broadcast %22 : vector<2x1x32xf32> to vector<2x8x32xf32>
    %30 = arith.mulf %28, %29 : vector<2x8x32xf32>
    %31 = vector.shape_cast %30 : vector<2x8x32xf32> to vector<16x32xf32>
    %c0_14 = arith.constant 0 : index
    %c0_15 = arith.constant 0 : index
    %32 = vector.load %arg5[%c0_14, %c0_15] : memref<32x32xf32, #tpu.memory_space<vmem>>, vector<32x32xf32>
    %cst_16 = arith.constant dense<0.000000e+00> : vector<16x32xf32>
    %33 = tpu.matmul %31, %32, %cst_16 {dimension_numbers = #tpu.dot_dimension_numbers<[1], [0], [0], [1], [0, 0, 1, 1], [], []>} : vector<16x32xf32>, vector<32x32xf32>, vector<16x32xf32> -> vector<16x32xf32>
    %34 = arith.addf %1, %33 : vector<16x32xf32>
    %35 = vector.shape_cast %34 : vector<16x32xf32> to vector<2x8x32xf32>
    %c0_17 = arith.constant 0 : index
    %c0_18 = arith.constant 0 : index
    %c0_19 = arith.constant 0 : index
    %36 = vector.load %arg6[%c0_17, %c0_18, %c0_19] : memref<2x8x32xf32, #tpu.memory_space<vmem>>, vector<2x8x32xf32>
    tpu.vector_store %arg6[%c0_17, %c0_18, %c0_19], %35 {strides = array<i32>} : memref<2x8x32xf32, #tpu.memory_space<vmem>>, vector<2x8x32xf32>,
    return
  }
  func.func @transform_0(%arg0: i32) -> (i32, i32, i32) {
    %c0_i32 = arith.constant 0 : i32
    %c0_i32_0 = arith.constant 0 : i32
    %c0_i32_1 = arith.constant 0 : i32
    return %arg0, %c0_i32, %c0_i32_0 : i32, i32, i32
  }
  func.func @transform_1(%arg0: i32) -> (i32, i32) {
    %c0_i32 = arith.constant 0 : i32
    %c0_i32_0 = arith.constant 0 : i32
    %c0_i32_1 = arith.constant 0 : i32
    return %c0_i32, %c0_i32_0 : i32, i32
  }
  func.func @transform_2(%arg0: i32) -> (i32, i32) {
    %c0_i32 = arith.constant 0 : i32
    %c0_i32_0 = arith.constant 0 : i32
    %c0_i32_1 = arith.constant 0 : i32
    return %c0_i32, %c0_i32_0 : i32, i32
  }
  func.func @transform_3(%arg0: i32) -> (i32, i32) {
    %c0_i32 = arith.constant 0 : i32
    %c0_i32_0 = arith.constant 0 : i32
    %c0_i32_1 = arith.constant 0 : i32
    return %c0_i32, %c0_i32_0 : i32, i32
  }
  func.func @transform_4(%arg0: i32) -> (i32, i32) {
    %c0_i32 = arith.constant 0 : i32
    %c0_i32_0 = arith.constant 0 : i32
    %c0_i32_1 = arith.constant 0 : i32
    return %c0_i32, %c0_i32_0 : i32, i32
  }
  func.func @transform_5(%arg0: i32) -> (i32, i32, i32) {
    %c0_i32 = arith.constant 0 : i32
    %c0_i32_0 = arith.constant 0 : i32
    %c0_i32_1 = arith.constant 0 : i32
    return %arg0, %c0_i32, %c0_i32_0 : i32, i32, i32
  }
}

</mosaic_0001>

<bundles_post_ra>
// kernel: tpu_custom_call.1
= control target key start
LH: loop header
LB: loop body
LE: loop exit
PB: predicated region body
PF: predicated region fallthrough
CT: control target
= control target key end

     0   :  { %10 = vsyncpa [#allocation3], 0  ;;  %s915_s0 = inlined_call_operand.hbm [shape: f32[2,8,32], index: 0, kind: input, shape index: {}, may-alias: {0,5}]   ;;  %s916_s1 = inlined_call_operand.vmem [shape: f32[32,32], index: 1, kind: input, shape index: {}]   ;;  %s917_s2 = inlined_call_operand.hbm [shape: f32[32,32], index: 2, kind: input, shape index: {}]   ;;  %s918_s3 = inlined_call_operand.hbm [shape: f32[32,32], index: 3, kind: input, shape index: {}]   ;;  %s919_s4 = inlined_call_operand.hbm [shape: f32[32,32], index: 4, kind: input, shape index: {}]   ;;  %s920_s5 = inlined_call_operand.hbm [shape: f32[2,8,32], index: 5, kind: output, shape index: {}, may-alias: {0,5}]  }
   0x1   :  { %11 = vsyncpa [#allocation6], 0 }
   0x2   :  { %12 = vsyncpa [#allocation9], 0 }
   0x3   :  { %13 = vsyncpa [#allocation4], 0  ;;  %s749_s18 = smov [#allocation5]   ;;  %s750_s20 = smov [#allocation2]  }
   0x4   :  { %s33_s19 = sshll.u32 %s749_s18, 4  ;;  %s19_s21 = sshll.u32 %s750_s20, 4  ;;  %s34_s19 = int_to_ptr.vmem [resolvable:$true] %s33_s19  ;;  %s786_s21 = int_to_ptr.vmem [resolvable:$true] %s19_s21 }
   0x5   :  { %s631_s24 = scalar_lea.hbm %s917_s2, 512 }
   0x6   :  { %p632_p0 = scmp.ne.s32.totalorder %s917_s2, %s631_s24  ;;  %p635_p1 = scmp.lt.u32.totalorder %s631_s24, %s917_s2 }
   0x8   :  { %p637_p2 = pnand %p635_p1, %p632_p0 }
   0xa   :  { %640 = shalt.err (!%p637_p2)
}
   0xb   :  { %s641_s29 = scalar_lea.vmem %s34_s19, 512  ;;  %p646_p4 = scmp.lt.s32.totalorder %s34_s19, %s34_s19 }
   0xc   :  { %p642_p3 = scmp.ne.s32.totalorder %s34_s19, %s641_s29  ;;  %p647_p5 = scmp.lt.s32.totalorder %s641_s29, %s641_s29 }
   0xe   :  { %p648_p6 = por %p647_p5, %p646_p4 }
  0x10   :  { %p649_p7 = pnand %p648_p6, %p642_p3 }
  0x12   :  { %652 = shalt.err (!%p649_p7)
}
  0x13   :  { %s751_s30 = smov 128   ;;  %s752_s6 = smov 8  }
  0x14   :  { %39 = dma.hbm_to_vmem [thread:$0]  %s917_s2, 512, %s34_s19, [#allocation6], %s751_s30, %s751_s30, %s752_s6  }
  0x15   :  { %s653_s11 = scalar_lea.hbm %s915_s0, 256 }
  0x16   :  { %p654_p8 = scmp.ne.s32.totalorder %s915_s0, %s653_s11  ;;  %p657_p9 = scmp.lt.u32.totalorder %s653_s11, %s915_s0 }
  0x18   :  { %p659_p10 = pnand %p657_p9, %p654_p8 }
  0x1a   :  { %662 = shalt.err (!%p659_p10)
}
  0x1b   :  { %s663_s16 = scalar_lea.vmem %s786_s21, 256  ;;  %p668_p12 = scmp.lt.s32.totalorder %s786_s21, %s786_s21 }
  0x1c   :  { %p664_p11 = scmp.ne.s32.totalorder %s786_s21, %s663_s16  ;;  %p669_p13 = scmp.lt.s32.totalorder %s663_s16, %s663_s16 }
  0x1e   :  { %p670_p0 = por %p669_p13, %p668_p12 }
  0x20   :  { %p671_p1 = pnand %p670_p0, %p664_p11 }
  0x22   :  { %674 = shalt.err (!%p671_p1)
}
  0x23   :  { %25 = dma.hbm_to_vmem [thread:$0]  %s915_s0, 256, %s786_s21, [#allocation3], %s751_s30, %s751_s30, %s752_s6  }
  0x24   :  { %s753_s18 = smov [#allocation7]   ;;  %s754_s20 = smov [#allocation8]  }
  0x25   :  { %s45_s19 = sshll.u32 %s753_s18, 4  ;;  %s57_s22 = sshll.u32 %s754_s20, 4  ;;  %s46_s19 = int_to_ptr.vmem [resolvable:$true] %s45_s19  ;;  %s823_s22 = int_to_ptr.vmem [resolvable:$true] %s57_s22 }
  0x26   :  { %s675_s25 = scalar_lea.hbm %s918_s3, 512 }
  0x27   :  { %p676_p2 = scmp.ne.s32.totalorder %s918_s3, %s675_s25  ;;  %p679_p3 = scmp.lt.u32.totalorder %s675_s25, %s918_s3 }
  0x29   :  { %p681_p4 = pnand %p679_p3, %p676_p2 }
  0x2b   :  { %684 = shalt.err (!%p681_p4)
}
  0x2c   :  { %s685_s0 = scalar_lea.vmem %s46_s19, 512  ;;  %p690_p6 = scmp.lt.s32.totalorder %s46_s19, %s46_s19 }
  0x2d   :  { %p686_p5 = scmp.ne.s32.totalorder %s46_s19, %s685_s0  ;;  %p691_p7 = scmp.lt.s32.totalorder %s685_s0, %s685_s0 }
  0x2f   :  { %p692_p8 = por %p691_p7, %p690_p6 }
  0x31   :  { %p693_p9 = pnand %p692_p8, %p686_p5 }
  0x33   :  { %696 = shalt.err (!%p693_p9)
}
  0x34   :  { %51 = dma.hbm_to_vmem [thread:$0]  %s918_s3, 512, %s46_s19, [#allocation6], %s751_s30, %s751_s30, %s752_s6  }
  0x35   :  { %s697_s10 = scalar_lea.hbm %s919_s4, 512 }
  0x36   :  { %p698_p10 = scmp.ne.s32.totalorder %s919_s4, %s697_s10  ;;  %p701_p11 = scmp.lt.u32.totalorder %s697_s10, %s919_s4 }
  0x38   :  { %p703_p12 = pnand %p701_p11, %p698_p10 }
  0x3a   :  { %706 = shalt.err (!%p703_p12)
}
  0x3b   :  { %s707_s15 = scalar_lea.vmem %s823_s22, 512  ;;  %p712_p0 = scmp.lt.s32.totalorder %s823_s22, %s823_s22 }
  0x3c   :  { %p708_p13 = scmp.ne.s32.totalorder %s823_s22, %s707_s15  ;;  %p713_p1 = scmp.lt.s32.totalorder %s707_s15, %s707_s15 }
  0x3e   :  { %p714_p2 = por %p713_p1, %p712_p0 }
  0x40   :  { %p715_p3 = pnand %p714_p2, %p708_p13 }
  0x42   :  { %718 = shalt.err (!%p715_p3)
}
  0x43   :  { %63 = dma.hbm_to_vmem [thread:$0]  %s919_s4, 512, %s823_s22, [#allocation9], %s751_s30, %s751_s30, %s752_s6  }
  0x44   :  { %741 = dma.done.wait [#allocation3], 256  }
  0x45   :  { %742 = vsyncadd [#allocation3], 4294967040 }
  0x46   :  { %743 = dma.done.wait [#allocation6], 1024  }
  0x47   :  { %744 = vsyncadd [#allocation6], 4294966272 }
  0x48   :  { %745 = dma.done.wait [#allocation9], 512  }
  0x49   :  { %746 = vsyncadd [#allocation9], 4294966784  ;;  %vm82_vm0 = vcmask 261120   ;;  %v164_v0 = vld [vmem:[#allocation5] sm:$0xff]  ;;  %v165_v1 = vld [vmem:[#allocation5 + $0x8] sm:$0xff] }
  0x4a   :  { %v166_v2 = vld [vmem:[#allocation5 + $0x10] sm:$0xff]  ;;  %v584_v3 = vpack.c.bf16 %v165_v1, %v164_v0  ;;  %v167_v4 = vld [vmem:[#allocation5 + $0x18] sm:$0xff]  ;;  %v80_v9 = vld [vmem:[%s916_s1 + $0x10] sm:$0xff] }
  0x4b   :  { %v860_v5 = vld [vmem:[#allocation2] sm:$0xff]  ;;  %v588_v6 = vpack.c.bf16 %v167_v4, %v166_v2  ;;  %v79_v8 = vld [vmem:[%s916_s1 + $0x8] sm:$0xff]  ;;  %v81_v11 = vld [vmem:[%s916_s1 + $0x18] sm:$0xff] }
  0x4c   :  { %551 = vmatprep.mubr.msk.f32.mxu1 %vm82_vm0, %v860_v5  ;;  %v78_v7 = vld [vmem:[%s916_s1] sm:$0xff]  ;;  %540 = vmatprep.mubr.msk.f32.mxu0 %vm82_vm0, %v860_v5  ;;  %v580_v12 = vpack.c.bf16 %v81_v11, %v80_v9  ;;  %v243_v13 = vld [vmem:[#allocation7] sm:$0xff]  ;;  %v244_v14 = vld [vmem:[#allocation7 + $0x8] sm:$0xff]  ;;  %s755_s1 = smov [#allocation10]  }
  0x4d   :  { %585 = vmatprep.subr.bf16.mxu1 %v584_v3  ;;  %v576_v10 = vpack.c.bf16 %v79_v8, %v78_v7  ;;  %v592_v15 = vpack.c.bf16 %v244_v14, %v243_v13  ;;  %v878_v16 = vld [vmem:[#allocation2 + $0x8] sm:$0xff]  ;;  %v245_v17 = vld [vmem:[#allocation7 + $0x10] sm:$0xff]  ;;  %v390_v20 = vld [vmem:[#allocation8] sm:$0xff]  ;;  %s484_s24 = sshll.u32 %s755_s1, 4  ;;  %s485_s24 = int_to_ptr.vmem [resolvable:$true] %s484_s24 }
  0x4e   :  { %587 = vmatpush3.bf16.msra.mxu1 %v584_v3  ;;  %v246_v18 = vld [vmem:[#allocation7 + $0x18] sm:$0xff]  ;;  %v391_v21 = vld [vmem:[#allocation8 + $0x8] sm:$0xff]  ;;  %v392_v23 = vld [vmem:[#allocation8 + $0x10] sm:$0xff]  ;;  %s719_s25 = scalar_lea.vmem %s485_s24, 256  ;;  %p724_p5 = scmp.lt.s32.totalorder %s485_s24, %s485_s24 }
  0x4f   :  { %589 = vmatprep.subr.bf16.mxu1 %v588_v6  ;;  %577 = vmatprep.subr.bf16.mxu0 %v576_v10  ;;  %v596_v19 = vpack.c.bf16 %v246_v18, %v245_v17  ;;  %v600_v22 = vpack.c.bf16 %v391_v21, %v390_v20  ;;  %v393_v24 = vld [vmem:[#allocation8 + $0x18] sm:$0xff]  ;;  %p720_p4 = scmp.ne.s32.totalorder %s485_s24, %s719_s25  ;;  %p725_p6 = scmp.lt.s32.totalorder %s719_s25, %s719_s25 }
  0x50   :  { %579 = vmatpush3.bf16.msra.mxu0 %v576_v10  ;;  %v604_v25 = vpack.c.bf16 %v393_v24, %v392_v23 }
  0x51   :  { %581 = vmatprep.subr.bf16.mxu0 %v580_v12  ;;  %p726_p7 = por %p725_p6, %p724_p5 }
  0x52   :  { %591 = vmatpush3.bf16.msra.mxu1 %v588_v6 }
  0x53   :  { %601 = vmatprep.subr.bf16.mxu1 %v600_v22  ;;  %p727_p8 = pnand %p726_p7, %p720_p4 }
  0x54   :  { %583 = vmatpush3.bf16.msra.mxu0 %v580_v12 }
  0x55   :  { %552 = vmatmul.mubr.msk.f32.vlgmr.msra.gmra.mrb[0].mxu1 %vm82_vm0, %v878_v16  ;;  %593 = vmatprep.subr.bf16.mxu0 %v592_v15 }
  0x56   :  { %603 = vmatpush3.bf16.msra.mxu1 %v600_v22 }
  0x57   :  { %541 = vmatmul.mubr.msk.f32.vlgmr.msra.gmra.mrb[0].mxu0 %vm82_vm0, %v878_v16  ;;  %605 = vmatprep.subr.bf16.mxu1 %v604_v25 }
  0x58   :  { %595 = vmatpush3.bf16.msra.mxu0 %v592_v15  ;;  %562 = vmatprep.mubr.msk.f32.mxu0 %vm82_vm0, %v860_v5 }
  0x59   :  { %597 = vmatprep.subr.bf16.mxu0 %v596_v19 }
  0x5a   :  { %607 = vmatpush3.bf16.msra.mxu1 %v604_v25 }
  0x5c   :  { %599 = vmatpush3.bf16.msra.mxu0 %v596_v19 }
  0x5f   :  { %563 = vmatmul.mubr.msk.f32.vlgmr.msra.gmra.mrb[2].mxu0 %vm82_vm0, %v878_v16 }
 0x128   :  { %v553_v26 = vpop.f32.mrb[0].mxu1 }
 0x129   :  { %v329_v27 = vsel %vm82_vm0, %v553_v26, -inf  ;;  %v234_v28 = vpop.f32.mrb[1].mxu1 }
 0x12a   :  { %v330_v29 = vrot.slane %v329_v27, 4  ;;  %v322_v30 = vsel %vm82_vm0, %v234_v28, -inf  ;;  %v542_v31 = vpop.f32.mrb[0].mxu0 }
 0x12b   :  { %v323_v32 = vrot.slane %v322_v30, 4  ;;  %v155_v33 = vpop.f32.mrb[1].mxu0  ;;  %v505_v60 = vmul.f32 -1.442695, %v542_v31 }
 0x12c   :  { %v331_v34 = vmax.f32 %v329_v27, %v330_v29  ;;  %v504_v62 = vmul.f32 -1.442695, %v155_v33 }
 0x12d   :  { %v324_v35 = vmax.f32 %v322_v30, %v323_v32 }
 0x12e   :  { %v332_v36 = vrot.slane %v331_v34, 2 }
 0x12f   :  { %v325_v37 = vrot.slane %v324_v35, 2 }
 0x130   :  { %v333_v38 = vmax.f32 %v331_v34, %v332_v36 }
 0x131   :  { %v326_v39 = vmax.f32 %v324_v35, %v325_v37 }
 0x132   :  { %v334_v40 = vrot.slane %v333_v38, 1  ;;  %v564_v41 = vpop.f32.mrb[2].mxu0 }
 0x133   :  { %v327_v42 = vrot.slane %v326_v39, 1  ;;  %v313_v43 = vpop.f32.mrb[3].mxu0 }
 0x134   :  { %v335_v44 = vmax.f32 %v333_v38, %v334_v40 }
 0x135   :  { %v328_v45 = vmax.f32 %v326_v39, %v327_v42 }
 0x136   :  { %v337_v46 = vsub.f32 %v553_v26, %v335_v44 }
 0x137   :  { %v336_v47 = vsub.f32 %v234_v28, %v328_v45 }
 0x138   :  { %v340_v48 = vmul.f32 1.442695, %v337_v46 }
 0x139   :  { %v338_v49 = vmul.f32 1.442695, %v336_v47 }
 0x13a   :  { %615 = vpow2.f32 %v340_v48 }
 0x13b   :  { %617 = vpow2.f32 %v338_v49 }
 0x13c   :  { %619 = vpow2.f32 %v505_v60 }
 0x13d   :  { %621 = vpow2.f32 %v504_v62 }
 0x144   :  { %v616_v50 = vpop.eup %615 }
 0x145   :  { %v618_v51 = vpop.eup %617  ;;  %v349_v52 = vsel %vm82_vm0, %v616_v50, 0.0 }
 0x146   :  { %v350_v53 = vrot.slane %v349_v52, 4  ;;  %v342_v54 = vsel %vm82_vm0, %v618_v51, 0.0  ;;  %v620_v4 = vpop.eup %619 }
 0x147   :  { %v343_v55 = vrot.slane %v342_v54, 4  ;;  %v622_v6 = vpop.eup %621  ;;  %v383_v9 = vadd.f32 1.0, %v620_v4 }
 0x148   :  { %v351_v56 = vadd.f32 %v350_v53, %v349_v52  ;;  %v382_v11 = vadd.f32 1.0, %v622_v6 }
 0x149   :  { %v344_v57 = vadd.f32 %v343_v55, %v342_v54 }
 0x14a   :  { %v352_v58 = vrot.slane %v351_v56, 2 }
 0x14b   :  { %v345_v59 = vrot.slane %v344_v57, 2 }
 0x14c   :  { %v353_v61 = vadd.f32 %v352_v58, %v351_v56 }
 0x14d   :  { %v346_v63 = vadd.f32 %v345_v59, %v344_v57 }
 0x14e   :  { %v354_v0 = vrot.slane %v353_v61, 1 }
 0x14f   :  { %v347_v1 = vrot.slane %v346_v63, 1 }
 0x150   :  { %v355_v2 = vadd.f32 %v354_v0, %v353_v61 }
 0x151   :  { %v348_v3 = vadd.f32 %v347_v1, %v346_v63 }
 0x152   :  { %623 = vrcp.f32 %v355_v2 }
 0x153   :  { %625 = vrcp.f32 %v348_v3 }
 0x154   :  { %627 = vrcp.f32 %v383_v9 }
 0x155   :  { %629 = vrcp.f32 %v382_v11 }
 0x15c   :  { %v624_v7 = vpop.eup %623 }
 0x15d   :  { %v626_v8 = vpop.eup %625  ;;  %v359_v10 = vmul.f32 %v624_v7, %v616_v50 }
 0x15e   :  { %v358_v12 = vmul.f32 %v626_v8, %v618_v51  ;;  %v628_v27 = vpop.eup %627 }
 0x15f   :  { %v361_v13 = vmul.f32 %v564_v41, %v359_v10  ;;  %v630_v29 = vpop.eup %629 }
 0x160   :  { %v360_v14 = vmul.f32 %v358_v12, %v313_v43 }
 0x161   :  { %v369_v15 = vsel %vm82_vm0, %v361_v13, 0.0 }
 0x162   :  { %v370_v17 = vrot.slane %v369_v15, 4  ;;  %v362_v18 = vsel %vm82_vm0, %v360_v14, 0.0 }
 0x163   :  { %v363_v19 = vrot.slane %v362_v18, 4 }
 0x164   :  { %v371_v20 = vadd.f32 %v370_v17, %v369_v15 }
 0x165   :  { %v364_v21 = vadd.f32 %v363_v19, %v362_v18 }
 0x166   :  { %v372_v22 = vrot.slane %v371_v20, 2 }
 0x167   :  { %v365_v23 = vrot.slane %v364_v21, 2 }
 0x168   :  { %v373_v24 = vadd.f32 %v372_v22, %v371_v20 }
 0x169   :  { %v366_v25 = vadd.f32 %v365_v23, %v364_v21 }
 0x16a   :  { %v374_v26 = vrot.slane %v373_v24, 1 }
 0x16b   :  { %v367_v28 = vrot.slane %v366_v25, 1 }
 0x16c   :  { %v375_v30 = vadd.f32 %v374_v26, %v373_v24 }
 0x16d   :  { %v368_v31 = vadd.f32 %v367_v28, %v366_v25 }
 0x16e   :  { %v389_v32 = vmul.f32 %v628_v27, %v375_v30 }
 0x16f   :  { %v388_v33 = vmul.f32 %v630_v29, %v368_v31 }
 0x171   :  { %573 = vmatprep.mubr.msk.f32.mxu1 %vm82_vm0, %v388_v33 }
 0x172   :  { %574 = vmatmul.mubr.msk.f32.vlgmr.msra.gmra.mrb[2].mxu1 %vm82_vm0, %v389_v32 }
 0x245   :  { %v575_v34 = vpop.f32.mrb[2].mxu1 }
 0x246   :  { %v476_v35 = vadd.f32 %v575_v34, %v878_v16  ;;  %v466_v36 = vpop.f32.mrb[3].mxu1 }
 0x247   :  { %v475_v37 = vadd.f32 %v466_v36, %v860_v5 }
 0x248   :  { %478 = vst.msk [vmem:[#allocation10 + $0x8] sm:$0xff] %vm82_vm0, %v476_v35 }
 0x249   :  { %477 = vst.msk [vmem:[#allocation10] sm:$0xff] %vm82_vm0, %v475_v37 }
 0x24a   :  { %730 = shalt.err (!%p727_p8)
}
 0x24b   :  { %s731_s28 = scalar_lea.hbm %s920_s5, 256 }
 0x24c   :  { %p732_p9 = scmp.ne.s32.totalorder %s920_s5, %s731_s28  ;;  %p735_p10 = scmp.lt.u32.totalorder %s731_s28, %s920_s5 }
 0x24e   :  { %p737_p11 = pnand %p735_p10, %p732_p9 }
 0x250   :  { %740 = shalt.err (!%p737_p11)
}
 0x251   :  { %490 = dma.vmem_to_hbm [thread:$0]  %s485_s24, 256, %s920_s5, [#allocation4], %s751_s30, %s751_s30, %s752_s6  }
 0x252   :  { %747 = dma.done.wait [#allocation4], 256  }
 0x253   :  { %748 = vsyncadd [#allocation4], 4294967040 }
 0x254   :  { %494 = vsyncpa [#allocation3], 1 }
 0x255   :  { %495 = vsyncpa [#allocation6], 1 }
 0x256   :  { %496 = vsyncpa [#allocation9], 1 }
 0x257   :  { %497 = vsyncpa [#allocation4], 1 }

</bundles_post_ra>
